<compile_context>
chip_gen: v7x
topology: tpu7x:2x2x1
jax: 0.10.0
libtpu: 0.0.40
codegen_flags: <defaults>
</compile_context>

<pallas_src>
import jax
import jax.numpy as jnp
from jax import lax
from jax.experimental import pallas as pl
from jax.experimental.pallas import tpu as pltpu
import numpy as np

# ---------------------------------------------------------------------------
# Problem sizes (small, consistent with the module). Powers of two are assumed
# by the bit-trick index math below.
# ---------------------------------------------------------------------------
BATCH = 2
NUM_NODES = 8
EMBED_DIM = 32
NUM_HEADS = 8
HEAD_DIM = EMBED_DIM // NUM_HEADS  # 4

LOG2_B = BATCH.bit_length() - 1        # 1
LOG2_DH = HEAD_DIM.bit_length() - 1    # 2
LOG2_D = EMBED_DIM.bit_length() - 1    # 5
LOG2_N = NUM_NODES.bit_length() - 1    # 3


def _iota(shape, dim):
    return lax.broadcasted_iota(jnp.int32, shape, dim)


def _mask01(cond):
    # 0/1 float32 matrix from a boolean condition (avoids bool->f32 converts).
    return jnp.where(cond, 1.0, 0.0).astype(jnp.float32)


# ---------------------------------------------------------------------------
# Pallas kernel: whole forward pass, single program (everything resident in
# VMEM; no grid — per-step overhead would dominate at this size).
# ---------------------------------------------------------------------------
def _mha_decoder_kernel(
    x_ref,       # (B, 4D)   [ctx | node0]
    nodes_ref,   # (B*N, D)  flattened nodes
    mask_ref,    # (B, N)    int32
    w1_ref,      # (4D, 3D)  block-diag [Wq1^T ; Wk1^T | Wv1^T]
    b1_ref,      # (1, 3D)   [bq1 | bk1 | bv1]
    wq2t_ref,    # (D, D)    Wq2^T
    bq2_ref,     # (1, D)
    wk2t_ref,    # (D, D)    Wk2^T
    bk2_ref,     # (1, D)
    out_ref,     # (B, N)
):
    f32 = jnp.float32
    B, N = out_ref.shape
    D, H, dh = EMBED_DIM, NUM_HEADS, HEAD_DIM
    R = B * H                                   # attention rows, r = h*B + b
    inv_sqrt_dh = 1.0 / (dh ** 0.5)
    inv_sqrt_d = 1.0 / (D ** 0.5)
    cl = (((1,), (1,)), ((), ()))               # contract last dims, no batch

    # ---- fused first-layer projections: ONE (B,4D)x(4D,3D) matmul ----------
    proj = jnp.dot(x_ref[...], w1_ref[...],
                   preferred_element_type=f32) + b1_ref[...]          # (B,3D)
    # lanes 0:D -> q1(ctx), D:2D -> k1(node0), 2D:3D -> v1(node0)

    # ---- head split: replicate rows, keep own-head lanes, compact via MXU --
    # rep[r, c] = proj[r & (B-1), c]
    rep = jnp.concatenate([proj] * H, axis=0)                          # (R,3D)
    r_i = _iota((R, 3 * D), 0)
    c_i = _iota((R, 3 * D), 1)
    head_of_col = (c_i & (D - 1)) >> LOG2_DH
    head_of_row = r_i >> LOG2_B
    rep = jnp.where(head_of_col == head_of_row, rep, 0.0)              # (R,3D)

    # compaction matrices: C_seg[c, d] = [c in segment] * [(c & (dh-1)) == d]
    cc = _iota((3 * D, dh), 0)
    dd = _iota((3 * D, dh), 1)
    lane_match = (cc & (dh - 1)) == dd
    seg = cc >> LOG2_D
    c_q = _mask01(lane_match & (seg == 0))
    c_k = _mask01(lane_match & (seg == 1))
    c_v = _mask01(lane_match & (seg == 2))

    q_h = jnp.dot(rep, c_q, preferred_element_type=f32)                # (R,dh)
    k_h = jnp.dot(rep, c_k, preferred_element_type=f32)                # (R,dh)
    v_h = jnp.dot(rep, c_v, preferred_element_type=f32)                # (R,dh)

    # ---- attention over heads, both batch rows at once (parity mask) -------
    scores = lax.dot_general(q_h, k_h, cl,
                             preferred_element_type=f32) * inv_sqrt_dh  # (R,R)
    rr = _iota((R, R), 0)
    rc = _iota((R, R), 1)
    same_batch = (rr & (B - 1)) == (rc & (B - 1))
    scores = jnp.where(same_batch, scores, -jnp.inf)
    scores = scores - jnp.max(scores, axis=-1, keepdims=True)
    p = jnp.exp(scores)
    attn = p * pl.reciprocal(jnp.sum(p, axis=-1, keepdims=True))
    y_h = jnp.dot(attn, v_h, preferred_element_type=f32)               # (R,dh)

    # ---- merge heads back to flat (B, D): tile-matmul + mask + pool --------
    td = _iota((dh, D), 0)
    tc = _iota((dh, D), 1)
    tile_mat = _mask01(td == (tc & (dh - 1)))                          # (dh,D)
    y_tiled = jnp.dot(y_h, tile_mat, preferred_element_type=f32)       # (R,D)
    fr = _iota((R, D), 0)
    fc = _iota((R, D), 1)
    y_tiled = jnp.where((fc >> LOG2_DH) == (fr >> LOG2_B), y_tiled, 0.0)
    pr = _iota((B, R), 0)
    pc = _iota((B, R), 1)
    pool = _mask01((pc & (B - 1)) == pr)                               # (B,R)
    y_flat = jnp.dot(pool, y_tiled, preferred_element_type=f32)        # (B,D)

    # ---- second-layer projections ------------------------------------------
    q2 = jnp.dot(y_flat, wq2t_ref[...],
                 preferred_element_type=f32) + bq2_ref[...]            # (B,D)
    k2 = jnp.dot(nodes_ref[...], wk2t_ref[...],
                 preferred_element_type=f32) + bk2_ref[...]            # (B*N,D)

    # ---- compatibility logits: block-diagonal extraction via 0/1 matmul ----
    logits_all = lax.dot_general(q2, k2, cl,
                                 preferred_element_type=f32) * inv_sqrt_d  # (B,B*N)
    er = _iota((B, B * N), 0)
    ec = _iota((B, B * N), 1)
    logits_all = jnp.where((ec >> LOG2_N) == er, logits_all, 0.0)
    xr = _iota((B * N, N), 0)
    xc = _iota((B * N, N), 1)
    extract = _mask01((xr & (N - 1)) == xc)                            # (B*N,N)
    logits = jnp.dot(logits_all, extract, preferred_element_type=f32)  # (B,N)

    # ---- tanh clipping, mask, softmax over nodes ----------------------------
    logits = 10.0 * jnp.tanh(logits)
    logits = jnp.where(mask_ref[...] == 1, -jnp.inf, logits)
    logits = logits - jnp.max(logits, axis=-1, keepdims=True)
    e = jnp.exp(logits)
    out_ref[...] = e * pl.reciprocal(jnp.sum(e, axis=-1, keepdims=True))


# ---------------------------------------------------------------------------
# One-time parameter repacking (done OUTSIDE the per-call jitted path).
# ---------------------------------------------------------------------------
def prepare_params(params):
    (Wq1, bq1, Wk1, bk1, Wv1, bv1, Wq2, bq2, Wk2, bk2) = params
    D = EMBED_DIM
    # Block-diagonal fused weight: [ctx | node0] @ W1 -> [q1 | k1 | v1].
    W1 = jnp.zeros((4 * D, 3 * D), jnp.float32)
    W1 = W1.at[: 3 * D, :D].set(Wq1.T)
    W1 = W1.at[3 * D :, D : 2 * D].set(Wk1.T)
    W1 = W1.at[3 * D :, 2 * D :].set(Wv1.T)
    b1 = jnp.concatenate([bq1, bk1, bv1]).reshape(1, 3 * D)
    return dict(
        W1=W1, b1=b1,
        Wq2T=jnp.asarray(Wq2.T, jnp.float32), bq2=bq2.reshape(1, D),
        Wk2T=jnp.asarray(Wk2.T, jnp.float32), bk2=bk2.reshape(1, D),
    )


# ---------------------------------------------------------------------------
# Wrapper: minimal per-call glue + pallas_call.
# ---------------------------------------------------------------------------
@jax.jit
def mha_decoder_forward(context_emb, nodes_emb, mask, packed):
    B, N, D = nodes_emb.shape
    X = jnp.concatenate([context_emb, nodes_emb[:, 0, :]], axis=1)  # (B, 4D)
    nodes_flat = nodes_emb.reshape(B * N, D)                        # (B*N, D)

    inputs = (
        X, nodes_flat, mask,
        packed["W1"], packed["b1"],
        packed["Wq2T"], packed["bq2"],
        packed["Wk2T"], packed["bk2"],
    )
    vmem = lambda: pl.BlockSpec(memory_space=pltpu.MemorySpace.VMEM)

    return pl.pallas_call(
        _mha_decoder_kernel,
        out_shape=jax.ShapeDtypeStruct((B, N), jnp.float32),
        in_specs=[vmem() for _ in inputs],
        out_specs=vmem(),
    )(*inputs)


# ---------------------------------------------------------------------------
# Pure-JAX reference (mirrors the PyTorch forward literally).
# ---------------------------------------------------------------------------
def reference_forward(context_emb, nodes_emb, mask, params):
    (Wq1, bq1, Wk1, bk1, Wv1, bv1, Wq2, bq2, Wk2, bk2) = params
    B, N, D = nodes_emb.shape
    H, dh = NUM_HEADS, HEAD_DIM

    q = context_emb @ Wq1.T + bq1                       # (B, D)
    k = nodes_emb @ Wk1.T + bk1                         # (B, N, D)
    v = nodes_emb @ Wv1.T + bv1                         # (B, N, D)
    q = jnp.broadcast_to(q[:, None, :], (B, N, D)).reshape(B, N, H, dh)
    k = k.reshape(B, N, H, dh)
    v = v.reshape(B, N, H, dh)

    s = jnp.einsum("bnhd,bngd->bnhg", q, k) / (dh ** 0.5)
    a = jax.nn.softmax(s, axis=-1)
    y = jnp.einsum("bnhg,bngd->bnhd", a, v).reshape(B, N, D)
    y = y[:, 0:1, :]                                    # (B, 1, D)

    q2 = y @ Wq2.T + bq2                                # (B, 1, D)
    k2 = nodes_emb @ Wk2.T + bk2                        # (B, N, D)
    logits = jnp.einsum("ikj,ilj->ilk", q2, k2).squeeze() / (D ** 0.5)
    logits = 10.0 * jnp.tanh(logits)
    logits = jnp.where(mask == 1, -jnp.inf, logits)
    return jax.nn.softmax(logits, axis=1)


# ---------------------------------------------------------------------------
# Deterministic parameter / input construction.
# ---------------------------------------------------------------------------
def make_params(key):
    D = EMBED_DIM
    ks = jax.random.split(key, 10)

    def xavier(k, out_f, in_f):
        bound = (6.0 / (in_f + out_f)) ** 0.5
        return jax.random.uniform(k, (out_f, in_f), jnp.float32, -bound, bound)

    def bias(k, out_f, in_f):
        bound = 1.0 / (in_f ** 0.5)
        return jax.random.uniform(k, (out_f,), jnp.float32, -bound, bound)

    Wq1 = xavier(ks[0], D, 3 * D); bq1 = bias(ks[1], D, 3 * D)
    Wk1 = xavier(ks[2], D, D);     bk1 = bias(ks[3], D, D)
    Wv1 = xavier(ks[4], D, D);     bv1 = bias(ks[5], D, D)
    Wq2 = xavier(ks[6], D, D);     bq2 = bias(ks[7], D, D)
    Wk2 = xavier(ks[8], D, D);     bk2 = bias(ks[9], D, D)
    return (Wq1, bq1, Wk1, bk1, Wv1, bv1, Wq2, bq2, Wk2, bk2)


if __name__ == "__main__":
    root = jax.random.PRNGKey(0)
    k_param, k_ctx, k_nodes = jax.random.split(root, 3)

    params = make_params(k_param)
    packed = prepare_params(params)   # one-time weight repack (not per-call)

    context_emb = jax.random.normal(k_ctx, (BATCH, 3 * EMBED_DIM), jnp.float32)
    nodes_emb = jax.random.normal(k_nodes, (BATCH, NUM_NODES, EMBED_DIM),
                                  jnp.float32)
    # Deterministic mask: last two nodes of every batch element are masked.
    mask = jnp.zeros((BATCH, NUM_NODES), jnp.int32).at[:, -2:].set(1)

    out = mha_decoder_forward(context_emb, nodes_emb, mask, packed)
    out = jax.block_until_ready(out)

    ref = reference_forward(context_emb, nodes_emb, mask, params)
    ref = jax.block_until_ready(ref)

    np.testing.assert_allclose(np.asarray(out), np.asarray(ref),
                               rtol=1e-3, atol=1e-3)
    assert out.shape == (BATCH, NUM_NODES)

    print("KERNEL_OK")
</pallas_src>

<mosaic_0001>
module attributes {stable_mosaic.version = 11 : i64} {
  func.func @_mha_decoder_kernel(%arg0: memref<2x128xf32, #tpu.memory_space<vmem>>, %arg1: memref<16x32xf32, #tpu.memory_space<vmem>>, %arg2: memref<2x8xi32, #tpu.memory_space<vmem>>, %arg3: memref<128x96xf32, #tpu.memory_space<vmem>>, %arg4: memref<1x96xf32, #tpu.memory_space<vmem>>, %arg5: memref<32x32xf32, #tpu.memory_space<vmem>>, %arg6: memref<1x32xf32, #tpu.memory_space<vmem>>, %arg7: memref<32x32xf32, #tpu.memory_space<vmem>>, %arg8: memref<1x32xf32, #tpu.memory_space<vmem>>, %arg9: memref<2x8xf32, #tpu.memory_space<vmem>>) attributes {dimension_semantics = [], scalar_prefetch = 0 : i64, scratch_operands = 0 : i64, tpu.core_type = #tpu.core_type<tc>} {
    %c0 = arith.constant 0 : index
    %c0_0 = arith.constant 0 : index
    %0 = vector.load %arg0[%c0, %c0_0] : memref<2x128xf32, #tpu.memory_space<vmem>>, vector<2x128xf32>
    %c0_1 = arith.constant 0 : index
    %c0_2 = arith.constant 0 : index
    %1 = vector.load %arg3[%c0_1, %c0_2] : memref<128x96xf32, #tpu.memory_space<vmem>>, vector<128x96xf32>
    %cst = arith.constant dense<0.000000e+00> : vector<2x96xf32>
    %2 = tpu.matmul %0, %1, %cst {dimension_numbers = #tpu.dot_dimension_numbers<[1], [0], [0], [1], [0, 0, 1, 1], [], []>} : vector<2x128xf32>, vector<128x96xf32>, vector<2x96xf32> -> vector<2x96xf32>
    %c0_3 = arith.constant 0 : index
    %c0_4 = arith.constant 0 : index
    %3 = vector.load %arg4[%c0_3, %c0_4] : memref<1x96xf32, #tpu.memory_space<vmem>>, vector<1x96xf32>
    %4 = vector.broadcast %3 : vector<1x96xf32> to vector<2x96xf32>
    %5 = arith.addf %2, %4 : vector<2x96xf32>
    %6 = tpu.concatenate %5, %5, %5, %5, %5, %5, %5, %5 in 0 : vector<2x96xf32>, vector<2x96xf32>, vector<2x96xf32>, vector<2x96xf32>, vector<2x96xf32>, vector<2x96xf32>, vector<2x96xf32>, vector<2x96xf32> -> vector<16x96xf32>
    %7 = tpu.iota {dimensions = array<i32: 0>} : vector<16x96xi32>
    %8 = tpu.iota {dimensions = array<i32: 1>} : vector<16x96xi32>
    %c31_i32 = arith.constant 31 : i32
    %9 = vector.broadcast %c31_i32 : i32 to vector<16x96xi32>
    %10 = arith.andi %8, %9 : vector<16x96xi32>
    %c2_i32 = arith.constant 2 : i32
    %11 = vector.broadcast %c2_i32 : i32 to vector<16x96xi32>
    %12 = arith.shrsi %10, %11 : vector<16x96xi32>
    %c1_i32 = arith.constant 1 : i32
    %13 = vector.broadcast %c1_i32 : i32 to vector<16x96xi32>
    %14 = arith.shrsi %7, %13 : vector<16x96xi32>
    %15 = arith.cmpi eq, %12, %14 : vector<16x96xi32>
    %cst_5 = arith.constant 0.000000e+00 : f32
    %16 = vector.broadcast %cst_5 : f32 to vector<16x96xf32>
    %17 = arith.select %15, %6, %16 : vector<16x96xi1>, vector<16x96xf32>
    %18 = tpu.iota {dimensions = array<i32: 0>} : vector<96x4xi32>
    %19 = tpu.iota {dimensions = array<i32: 1>} : vector<96x4xi32>
    %c3_i32 = arith.constant 3 : i32
    %20 = vector.broadcast %c3_i32 : i32 to vector<96x4xi32>
    %21 = arith.andi %18, %20 : vector<96x4xi32>
    %22 = arith.cmpi eq, %21, %19 : vector<96x4xi32>
    %c5_i32 = arith.constant 5 : i32
    %23 = vector.broadcast %c5_i32 : i32 to vector<96x4xi32>
    %24 = arith.shrsi %18, %23 : vector<96x4xi32>
    %c0_i32 = arith.constant 0 : i32
    %25 = vector.broadcast %c0_i32 : i32 to vector<96x4xi32>
    %26 = arith.cmpi eq, %24, %25 : vector<96x4xi32>
    %27 = arith.andi %22, %26 : vector<96x4xi1>
    %cst_6 = arith.constant 1.000000e+00 : f32
    %cst_7 = arith.constant 0.000000e+00 : f32
    %28 = vector.broadcast %cst_6 : f32 to vector<96x4xf32>
    %29 = vector.broadcast %cst_7 : f32 to vector<96x4xf32>
    %30 = arith.select %27, %28, %29 : vector<96x4xi1>, vector<96x4xf32>
    %c1_i32_8 = arith.constant 1 : i32
    %31 = vector.broadcast %c1_i32_8 : i32 to vector<96x4xi32>
    %32 = arith.cmpi eq, %24, %31 : vector<96x4xi32>
    %33 = arith.andi %22, %32 : vector<96x4xi1>
    %cst_9 = arith.constant 1.000000e+00 : f32
    %cst_10 = arith.constant 0.000000e+00 : f32
    %34 = vector.broadcast %cst_9 : f32 to vector<96x4xf32>
    %35 = vector.broadcast %cst_10 : f32 to vector<96x4xf32>
    %36 = arith.select %33, %34, %35 : vector<96x4xi1>, vector<96x4xf32>
    %c2_i32_11 = arith.constant 2 : i32
    %37 = vector.broadcast %c2_i32_11 : i32 to vector<96x4xi32>
    %38 = arith.cmpi eq, %24, %37 : vector<96x4xi32>
    %39 = arith.andi %22, %38 : vector<96x4xi1>
    %cst_12 = arith.constant 1.000000e+00 : f32
    %cst_13 = arith.constant 0.000000e+00 : f32
    %40 = vector.broadcast %cst_12 : f32 to vector<96x4xf32>
    %41 = vector.broadcast %cst_13 : f32 to vector<96x4xf32>
    %42 = arith.select %39, %40, %41 : vector<96x4xi1>, vector<96x4xf32>
    %cst_14 = arith.constant dense<0.000000e+00> : vector<16x4xf32>
    %43 = tpu.matmul %17, %30, %cst_14 {dimension_numbers = #tpu.dot_dimension_numbers<[1], [0], [0], [1], [0, 0, 1, 1], [], []>} : vector<16x96xf32>, vector<96x4xf32>, vector<16x4xf32> -> vector<16x4xf32>
    %cst_15 = arith.constant dense<0.000000e+00> : vector<16x4xf32>
    %44 = tpu.matmul %17, %36, %cst_15 {dimension_numbers = #tpu.dot_dimension_numbers<[1], [0], [0], [1], [0, 0, 1, 1], [], []>} : vector<16x96xf32>, vector<96x4xf32>, vector<16x4xf32> -> vector<16x4xf32>
    %cst_16 = arith.constant dense<0.000000e+00> : vector<16x4xf32>
    %45 = tpu.matmul %17, %42, %cst_16 {dimension_numbers = #tpu.dot_dimension_numbers<[1], [0], [0], [1], [0, 0, 1, 1], [], []>} : vector<16x96xf32>, vector<96x4xf32>, vector<16x4xf32> -> vector<16x4xf32>
    %cst_17 = arith.constant dense<0.000000e+00> : vector<16x16xf32>
    %46 = tpu.matmul %43, %44, %cst_17 {dimension_numbers = #tpu.dot_dimension_numbers<[1], [1], [0], [0], [0, 0, 1, 0], [], []>} : vector<16x4xf32>, vector<16x4xf32>, vector<16x16xf32> -> vector<16x16xf32>
    %cst_18 = arith.constant 5.000000e-01 : f32
    %47 = vector.broadcast %cst_18 : f32 to vector<16x16xf32>
    %48 = arith.mulf %46, %47 : vector<16x16xf32>
    %49 = tpu.iota {dimensions = array<i32: 0>} : vector<16x16xi32>
    %50 = tpu.iota {dimensions = array<i32: 1>} : vector<16x16xi32>
    %c1_i32_19 = arith.constant 1 : i32
    %51 = vector.broadcast %c1_i32_19 : i32 to vector<16x16xi32>
    %52 = arith.andi %49, %51 : vector<16x16xi32>
    %c1_i32_20 = arith.constant 1 : i32
    %53 = vector.broadcast %c1_i32_20 : i32 to vector<16x16xi32>
    %54 = arith.andi %50, %53 : vector<16x16xi32>
    %55 = arith.cmpi eq, %52, %54 : vector<16x16xi32>
    %cst_21 = arith.constant 0xFF800000 : f32
    %56 = vector.broadcast %cst_21 : f32 to vector<16x16xf32>
    %57 = arith.select %55, %48, %56 : vector<16x16xi1>, vector<16x16xf32>
    %cst_22 = arith.constant dense<0xFF800000> : vector<16xf32>
    %58 = vector.multi_reduction <maximumf>, %57, %cst_22 [1] : vector<16x16xf32> to vector<16xf32>
    %59 = vector.shape_cast %58 : vector<16xf32> to vector<16x1xf32>
    %60 = vector.broadcast %59 : vector<16x1xf32> to vector<16x16xf32>
    %61 = arith.subf %57, %60 : vector<16x16xf32>
    %62 = math.exp %61 : vector<16x16xf32>
    %cst_23 = arith.constant dense<0.000000e+00> : vector<16xf32>
    %63 = vector.multi_reduction <add>, %62, %cst_23 [1] : vector<16x16xf32> to vector<16xf32>
    %64 = vector.shape_cast %63 : vector<16xf32> to vector<16x1xf32>
    %65 = tpu.reciprocal %64 : vector<16x1xf32> -> vector<16x1xf32>
    %66 = vector.broadcast %65 : vector<16x1xf32> to vector<16x16xf32>
    %67 = arith.mulf %62, %66 : vector<16x16xf32>
    %cst_24 = arith.constant dense<0.000000e+00> : vector<16x4xf32>
    %68 = tpu.matmul %67, %45, %cst_24 {dimension_numbers = #tpu.dot_dimension_numbers<[1], [0], [0], [1], [0, 0, 1, 1], [], []>} : vector<16x16xf32>, vector<16x4xf32>, vector<16x4xf32> -> vector<16x4xf32>
    %69 = tpu.iota {dimensions = array<i32: 0>} : vector<4x32xi32>
    %70 = tpu.iota {dimensions = array<i32: 1>} : vector<4x32xi32>
    %c3_i32_25 = arith.constant 3 : i32
    %71 = vector.broadcast %c3_i32_25 : i32 to vector<4x32xi32>
    %72 = arith.andi %70, %71 : vector<4x32xi32>
    %73 = arith.cmpi eq, %69, %72 : vector<4x32xi32>
    %cst_26 = arith.constant 1.000000e+00 : f32
    %cst_27 = arith.constant 0.000000e+00 : f32
    %74 = vector.broadcast %cst_26 : f32 to vector<4x32xf32>
    %75 = vector.broadcast %cst_27 : f32 to vector<4x32xf32>
    %76 = arith.select %73, %74, %75 : vector<4x32xi1>, vector<4x32xf32>
    %cst_28 = arith.constant dense<0.000000e+00> : vector<16x32xf32>
    %77 = tpu.matmul %68, %76, %cst_28 {dimension_numbers = #tpu.dot_dimension_numbers<[1], [0], [0], [1], [0, 0, 1, 1], [], []>} : vector<16x4xf32>, vector<4x32xf32>, vector<16x32xf32> -> vector<16x32xf32>
    %78 = tpu.iota {dimensions = array<i32: 0>} : vector<16x32xi32>
    %79 = tpu.iota {dimensions = array<i32: 1>} : vector<16x32xi32>
    %c2_i32_29 = arith.constant 2 : i32
    %80 = vector.broadcast %c2_i32_29 : i32 to vector<16x32xi32>
    %81 = arith.shrsi %79, %80 : vector<16x32xi32>
    %c1_i32_30 = arith.constant 1 : i32
    %82 = vector.broadcast %c1_i32_30 : i32 to vector<16x32xi32>
    %83 = arith.shrsi %78, %82 : vector<16x32xi32>
    %84 = arith.cmpi eq, %81, %83 : vector<16x32xi32>
    %cst_31 = arith.constant 0.000000e+00 : f32
    %85 = vector.broadcast %cst_31 : f32 to vector<16x32xf32>
    %86 = arith.select %84, %77, %85 : vector<16x32xi1>, vector<16x32xf32>
    %87 = tpu.iota {dimensions = array<i32: 0>} : vector<2x16xi32>
    %88 = tpu.iota {dimensions = array<i32: 1>} : vector<2x16xi32>
    %c1_i32_32 = arith.constant 1 : i32
    %89 = vector.broadcast %c1_i32_32 : i32 to vector<2x16xi32>
    %90 = arith.andi %88, %89 : vector<2x16xi32>
    %91 = arith.cmpi eq, %90, %87 : vector<2x16xi32>
    %cst_33 = arith.constant 1.000000e+00 : f32
    %cst_34 = arith.constant 0.000000e+00 : f32
    %92 = vector.broadcast %cst_33 : f32 to vector<2x16xf32>
    %93 = vector.broadcast %cst_34 : f32 to vector<2x16xf32>
    %94 = arith.select %91, %92, %93 : vector<2x16xi1>, vector<2x16xf32>
    %cst_35 = arith.constant dense<0.000000e+00> : vector<2x32xf32>
    %95 = tpu.matmul %94, %86, %cst_35 {dimension_numbers = #tpu.dot_dimension_numbers<[1], [0], [0], [1], [0, 0, 1, 1], [], []>} : vector<2x16xf32>, vector<16x32xf32>, vector<2x32xf32> -> vector<2x32xf32>
    %c0_36 = arith.constant 0 : index
    %c0_37 = arith.constant 0 : index
    %96 = vector.load %arg5[%c0_36, %c0_37] : memref<32x32xf32, #tpu.memory_space<vmem>>, vector<32x32xf32>
    %cst_38 = arith.constant dense<0.000000e+00> : vector<2x32xf32>
    %97 = tpu.matmul %95, %96, %cst_38 {dimension_numbers = #tpu.dot_dimension_numbers<[1], [0], [0], [1], [0, 0, 1, 1], [], []>} : vector<2x32xf32>, vector<32x32xf32>, vector<2x32xf32> -> vector<2x32xf32>
    %c0_39 = arith.constant 0 : index
    %c0_40 = arith.constant 0 : index
    %98 = vector.load %arg6[%c0_39, %c0_40] : memref<1x32xf32, #tpu.memory_space<vmem>>, vector<1x32xf32>
    %99 = vector.broadcast %98 : vector<1x32xf32> to vector<2x32xf32>
    %100 = arith.addf %97, %99 : vector<2x32xf32>
    %c0_41 = arith.constant 0 : index
    %c0_42 = arith.constant 0 : index
    %101 = vector.load %arg1[%c0_41, %c0_42] : memref<16x32xf32, #tpu.memory_space<vmem>>, vector<16x32xf32>
    %c0_43 = arith.constant 0 : index
    %c0_44 = arith.constant 0 : index
    %102 = vector.load %arg7[%c0_43, %c0_44] : memref<32x32xf32, #tpu.memory_space<vmem>>, vector<32x32xf32>
    %cst_45 = arith.constant dense<0.000000e+00> : vector<16x32xf32>
    %103 = tpu.matmul %101, %102, %cst_45 {dimension_numbers = #tpu.dot_dimension_numbers<[1], [0], [0], [1], [0, 0, 1, 1], [], []>} : vector<16x32xf32>, vector<32x32xf32>, vector<16x32xf32> -> vector<16x32xf32>
    %c0_46 = arith.constant 0 : index
    %c0_47 = arith.constant 0 : index
    %104 = vector.load %arg8[%c0_46, %c0_47] : memref<1x32xf32, #tpu.memory_space<vmem>>, vector<1x32xf32>
    %105 = vector.broadcast %104 : vector<1x32xf32> to vector<16x32xf32>
    %106 = arith.addf %103, %105 : vector<16x32xf32>
    %cst_48 = arith.constant dense<0.000000e+00> : vector<2x16xf32>
    %107 = tpu.matmul %100, %106, %cst_48 {dimension_numbers = #tpu.dot_dimension_numbers<[1], [1], [0], [0], [0, 0, 1, 0], [], []>} : vector<2x32xf32>, vector<16x32xf32>, vector<2x16xf32> -> vector<2x16xf32>
    %cst_49 = arith.constant 0.176776692 : f32
    %108 = vector.broadcast %cst_49 : f32 to vector<2x16xf32>
    %109 = arith.mulf %107, %108 : vector<2x16xf32>
    %110 = tpu.iota {dimensions = array<i32: 0>} : vector<2x16xi32>
    %111 = tpu.iota {dimensions = array<i32: 1>} : vector<2x16xi32>
    %c3_i32_50 = arith.constant 3 : i32
    %112 = vector.broadcast %c3_i32_50 : i32 to vector<2x16xi32>
    %113 = arith.shrsi %111, %112 : vector<2x16xi32>
    %114 = arith.cmpi eq, %113, %110 : vector<2x16xi32>
    %cst_51 = arith.constant 0.000000e+00 : f32
    %115 = vector.broadcast %cst_51 : f32 to vector<2x16xf32>
    %116 = arith.select %114, %109, %115 : vector<2x16xi1>, vector<2x16xf32>
    %117 = tpu.iota {dimensions = array<i32: 0>} : vector<16x8xi32>
    %118 = tpu.iota {dimensions = array<i32: 1>} : vector<16x8xi32>
    %c7_i32 = arith.constant 7 : i32
    %119 = vector.broadcast %c7_i32 : i32 to vector<16x8xi32>
    %120 = arith.andi %117, %119 : vector<16x8xi32>
    %121 = arith.cmpi eq, %120, %118 : vector<16x8xi32>
    %cst_52 = arith.constant 1.000000e+00 : f32
    %cst_53 = arith.constant 0.000000e+00 : f32
    %122 = vector.broadcast %cst_52 : f32 to vector<16x8xf32>
    %123 = vector.broadcast %cst_53 : f32 to vector<16x8xf32>
    %124 = arith.select %121, %122, %123 : vector<16x8xi1>, vector<16x8xf32>
    %cst_54 = arith.constant dense<0.000000e+00> : vector<2x8xf32>
    %125 = tpu.matmul %116, %124, %cst_54 {dimension_numbers = #tpu.dot_dimension_numbers<[1], [0], [0], [1], [0, 0, 1, 1], [], []>} : vector<2x16xf32>, vector<16x8xf32>, vector<2x8xf32> -> vector<2x8xf32>
    %126 = math.tanh %125 : vector<2x8xf32>
    %cst_55 = arith.constant 1.000000e+01 : f32
    %127 = vector.broadcast %cst_55 : f32 to vector<2x8xf32>
    %128 = arith.mulf %127, %126 : vector<2x8xf32>
    %c0_56 = arith.constant 0 : index
    %c0_57 = arith.constant 0 : index
    %129 = vector.load %arg2[%c0_56, %c0_57] : memref<2x8xi32, #tpu.memory_space<vmem>>, vector<2x8xi32>
    %c1_i32_58 = arith.constant 1 : i32
    %130 = vector.broadcast %c1_i32_58 : i32 to vector<2x8xi32>
    %131 = arith.cmpi eq, %129, %130 : vector<2x8xi32>
    %cst_59 = arith.constant 0xFF800000 : f32
    %132 = vector.broadcast %cst_59 : f32 to vector<2x8xf32>
    %133 = arith.select %131, %132, %128 : vector<2x8xi1>, vector<2x8xf32>
    %cst_60 = arith.constant dense<0xFF800000> : vector<2xf32>
    %134 = vector.multi_reduction <maximumf>, %133, %cst_60 [1] : vector<2x8xf32> to vector<2xf32>
    %135 = vector.shape_cast %134 : vector<2xf32> to vector<2x1xf32>
    %136 = vector.broadcast %135 : vector<2x1xf32> to vector<2x8xf32>
    %137 = arith.subf %133, %136 : vector<2x8xf32>
    %138 = math.exp %137 : vector<2x8xf32>
    %cst_61 = arith.constant dense<0.000000e+00> : vector<2xf32>
    %139 = vector.multi_reduction <add>, %138, %cst_61 [1] : vector<2x8xf32> to vector<2xf32>
    %140 = vector.shape_cast %139 : vector<2xf32> to vector<2x1xf32>
    %141 = tpu.reciprocal %140 : vector<2x1xf32> -> vector<2x1xf32>
    %142 = vector.broadcast %141 : vector<2x1xf32> to vector<2x8xf32>
    %143 = arith.mulf %138, %142 : vector<2x8xf32>
    %c0_62 = arith.constant 0 : index
    %c0_63 = arith.constant 0 : index
    %144 = vector.load %arg9[%c0_62, %c0_63] : memref<2x8xf32, #tpu.memory_space<vmem>>, vector<2x8xf32>
    tpu.vector_store %arg9[%c0_62, %c0_63], %143 {strides = array<i32>} : memref<2x8xf32, #tpu.memory_space<vmem>>, vector<2x8xf32>,
    return
  }
}

</mosaic_0001>

<bundles_post_ra>
// kernel: mha_decoder_forward.1
= control target key start
LH: loop header
LB: loop body
LE: loop exit
PB: predicated region body
PF: predicated region fallthrough
CT: control target
= control target key end

     0   :  { %v140_v3 = vlaneseq  ;;  %v1788_v4 = vmov 0.0|0.0   ;;  %vm2412_vm0 = vmmov 0   ;;  %v1790_v7 = vmov 0.0   ;;  %s2402_s0 = inlined_call_operand.vmem [shape: f32[2,128], index: 0, kind: input, shape index: {}]   ;;  %s2403_s1 = inlined_call_operand.vmem [shape: f32[16,32], index: 1, kind: input, shape index: {}]   ;;  %s2404_s2 = inlined_call_operand.vmem [shape: s32[2,8], index: 2, kind: input, shape index: {}]   ;;  %s2405_s3 = inlined_call_operand.vmem [shape: f32[128,96], index: 3, kind: input, shape index: {}]   ;;  %s2406_s4 = inlined_call_operand.vmem [shape: f32[1,96], index: 4, kind: input, shape index: {}]   ;;  %s2407_s5 = inlined_call_operand.vmem [shape: f32[32,32], index: 5, kind: input, shape index: {}]   ;;  %s2408_s6 = inlined_call_operand.vmem [shape: f32[1,32], index: 6, kind: input, shape index: {}]   ;;  %s2409_s7 = inlined_call_operand.vmem [shape: f32[32,32], index: 7, kind: input, shape index: {}]   ;;  %s2410_s8 = inlined_call_operand.vmem [shape: f32[1,32], index: 8, kind: input, shape index: {}]   ;;  %s2411_s9 = inlined_call_operand.hbm [shape: f32[2,8], index: 9, kind: output, shape index: {}]  }
   0x1   :  { %v34_v0 = vld [vmem:[%s2405_s3] sm:$0xff]  ;;  %v35_v1 = vld [vmem:[%s2405_s3 + $0x8] sm:$0xff]  ;;  %v36_v2 = vld [vmem:[%s2405_s3 + $0x10] sm:$0xff]  ;;  %1614 = vmatprep.subr.bf16.mxu0 %v1788_v4  ;;  %1468 = vmatprep.mubr.msk.f32.mxu0 %vm2412_vm0, %v1790_v7  ;;  %v2428_v19 = vmov 0 }
   0x2   :  { %v1615_v5 = vpack.c.bf16 %v35_v1, %v34_v0  ;;  %v37_v6 = vld [vmem:[%s2405_s3 + $0x18] sm:$0xff]  ;;  %v1858_v8 = vshrl.u32 %v140_v3, 7  ;;  %v1860_v9 = vand.u32 127, %v140_v3  ;;  %v38_v11 = vld [vmem:[%s2405_s3 + $0x20] sm:$0xff]  ;;  %v39_v12 = vld [vmem:[%s2405_s3 + $0x28] sm:$0xff] }
   0x3   :  { %v1618_v10 = vpack.c.bf16 %v37_v6, %v36_v2 }
   0x4   :  { %1616 = vmatpush3.bf16.msra.mxu0 %v1615_v5  ;;  %v1870_v13 = vadd.s32 8, %v1858_v8  ;;  %v163_v14 = vand.u32 3, %v1858_v8  ;;  %v1874_v15 = vshra.s32 %v1858_v8, 5  ;;  %v153_v16 = vadd.s32 16, %v1858_v8 }
   0x5   :  { %1617 = vmatprep.subr.bf16.mxu0 %v1788_v4  ;;  %v154_v17 = vadd.s32 24, %v1858_v8 }
   0x6   :  { %v164_v18 = vand.u32 3, %v1870_v13  ;;  %vm1880_vm1 = vcmp.eq.s32.totalorder %v163_v14, %v1860_v9  ;;  %v1885_v20 = vshra.s32 %v1870_v13, 5 }
   0x7   :  { %v2429_v19 = vsel %vm1880_vm1, 4294967295, %v2428_v19 }
   0x8   :  { %14 = vsyncpa [#allocation3], 0  ;;  %1619 = vmatpush3.bf16.msra.mxu0 %v1618_v10  ;;  %v1621_v21 = vpack.c.bf16 %v39_v12, %v38_v11  ;;  %vm199_vm2 = vcmp.eq.s32.totalorder %v1874_v15, 0  ;;  %v165_v22 = vand.u32 3, %v153_v16  ;;  %v40_v23 = vld [vmem:[%s2405_s3 + $0x30] sm:$0xff]  ;;  %v41_v24 = vld [vmem:[%s2405_s3 + $0x38] sm:$0xff]  ;;  %vm1896_vm3 = vcmp.eq.s32.totalorder %v164_v18, %v1860_v9 }
   0x9   :  { %1620 = vmatprep.subr.bf16.mxu0 %v1788_v4  ;;  %v2430_v25 = vmov 0  ;;  %vm200_vm4 = vcmp.eq.s32.totalorder %v1885_v20, 0  ;;  %vm1903_vm5 = vmand %vm1880_vm1, %vm199_vm2  ;;  %v166_v27 = vand.u32 3, %v154_v17  ;;  %v1907_v28 = vshra.s32 %v153_v16, 5  ;;  %v42_v35 = vld [vmem:[%s2405_s3 + $0x40] sm:$0xff]  ;;  %v43_v36 = vld [vmem:[%s2405_s3 + $0x48] sm:$0xff] }
   0xa   :  { %v2431_v25 = vsel %vm1896_vm3, 4294967295, %v2430_v25  ;;  %vm212_vm6 = vmand %vm1896_vm3, %vm200_vm4  ;;  %v1911_v29 = vshra.s32 %v154_v17, 5  ;;  %v155_v30 = vadd.s32 32, %v1858_v8  ;;  %v156_v31 = vadd.s32 40, %v1858_v8  ;;  %v44_v45 = vld [vmem:[%s2405_s3 + $0x50] sm:$0xff]  ;;  %v45_v46 = vld [vmem:[%s2405_s3 + $0x58] sm:$0xff] }
   0xb   :  { %vm1638_vm7 = vmpackc.low %vm212_vm6, %vm1903_vm5  ;;  %v1624_v32 = vpack.c.bf16 %v41_v24, %v40_v23  ;;  %v1791_v33 = vmov 1.0|1.0   ;;  %vm1919_vm8 = vcmp.eq.s32.totalorder %v165_v22, %v1860_v9  ;;  %v2434_v34 = vmov 0  ;;  %v46_v54 = vld [vmem:[%s2405_s3 + $0x60] sm:$0xff]  ;;  %v47_v55 = vld [vmem:[%s2405_s3 + $0x68] sm:$0xff]  ;;  %s1792_s20 = smov [#allocation2]  }
   0xc   :  { %1622 = vmatpush3.bf16.msra.mxu0 %v1621_v21  ;;  %1639 = vmatprep.subr.msk.bf16.mxu1 %vm1638_vm7, %v1791_v33  ;;  %v2435_v34 = vsel %vm1919_vm8, 4294967295, %v2434_v34  ;;  %vm201_vm9 = vcmp.eq.s32.totalorder %v1907_v28, 0  ;;  %vm1933_vm10 = vcmp.eq.s32.totalorder %v166_v27, %v1860_v9  ;;  %v2436_v37 = vmov 0  ;;  %v48_v62 = vld [vmem:[%s2405_s3 + $0x70] sm:$0xff]  ;;  %v49_v63 = vld [vmem:[%s2405_s3 + $0x78] sm:$0xff]  ;;  %v995_v51 = vld [vmem:[%s2409_s7 + $0x8] sm:$0xff] }
   0xd   :  { %1623 = vmatprep.subr.bf16.mxu0 %v1788_v4  ;;  %1641 = vmatpush3.bf16.msk.msra.mxu1 %vm1638_vm7, %v1791_v33  ;;  %v2437_v37 = vsel %vm1933_vm10, 4294967295, %v2436_v37  ;;  %vm202_vm11 = vcmp.eq.s32.totalorder %v1911_v29, 0  ;;  %v167_v38 = vand.u32 3, %v155_v30  ;;  %v1938_v39 = vshra.s32 %v155_v30, 5  ;;  %vm1942_vm12 = vmand %vm1919_vm8, %vm201_vm9  ;;  %v33_v5 = vld [vmem:[%s2402_s0] sm:$0x3] }
   0xe   :  { %v168_v41 = vand.u32 3, %v156_v31  ;;  %v1946_v42 = vshra.s32 %v156_v31, 5  ;;  %v1627_v43 = vpack.c.bf16 %v43_v36, %v42_v35  ;;  %vm214_vm13 = vmand %vm1933_vm10, %vm202_vm11  ;;  %v157_v44 = vadd.s32 48, %v1858_v8  ;;  %v993_v56 = vld [vmem:[%s2403_s1 + $0x8] sm:$0xff] }
   0xf   :  { %vm271_vm14 = vcmp.eq.s32.totalorder %v1874_v15, 2  ;;  %vm1642_vm15 = vmpackc.low %vm214_vm13, %vm1942_vm12  ;;  %v158_v47 = vadd.s32 56, %v1858_v8  ;;  %vm1964_vm2 = vcmp.eq.s32.totalorder %v167_v38, %v1860_v9  ;;  %vm203_vm4 = vcmp.eq.s32.totalorder %v1938_v39, 0  ;;  %v1280_v38 = vld [vmem:[%s2406_s4] ss:$0 sm:$0xff] }
  0x10   :  { %1625 = vmatpush3.bf16.msra.mxu0 %v1624_v32  ;;  %1643 = vmatprep.subr.msk.bf16.mxu1 %vm1642_vm15, %v1791_v33  ;;  %vm1971_vm5 = vcmp.eq.s32.totalorder %v168_v41, %v1860_v9  ;;  %v2442_v49 = vmov 0  ;;  %vm204_vm6 = vcmp.eq.s32.totalorder %v1946_v42, 0  ;;  %v1630_v50 = vpack.c.bf16 %v45_v46, %v44_v45  ;;  %vm1978_vm7 = vmand %vm1880_vm1, %vm271_vm14 }
  0x11   :  { %1626 = vmatprep.subr.bf16.mxu0 %v1788_v4  ;;  %1645 = vmatpush3.bf16.msk.msra.mxu1 %vm1642_vm15, %v1791_v33  ;;  %v2443_v49 = vsel %vm1971_vm5, 4294967295, %v2442_v49  ;;  %v169_v52 = vand.u32 3, %v157_v44  ;;  %v1982_v53 = vshra.s32 %v157_v44, 5  ;;  %vm272_vm9 = vcmp.eq.s32.totalorder %v1885_v20, 2  ;;  %vm1994_vm11 = vmand %vm1964_vm2, %vm203_vm4 }
  0x12   :  { %v170_v57 = vand.u32 3, %v158_v47  ;;  %v1998_v58 = vshra.s32 %v158_v47, 5  ;;  %vm273_vm12 = vcmp.eq.s32.totalorder %v1907_v28, 2  ;;  %vm216_vm13 = vmand %vm1971_vm5, %vm204_vm6  ;;  %vm274_vm14 = vcmp.eq.s32.totalorder %v1911_v29, 2 }
  0x13   :  { %vm1646_vm15 = vmpackc.low %vm216_vm13, %vm1994_vm11  ;;  %v1633_v59 = vpack.c.bf16 %v47_v55, %v46_v54  ;;  %vm2014_vm0 = vcmp.eq.s32.totalorder %v169_v52, %v1860_v9  ;;  %v2450_v61 = vmov 0  ;;  %vm205_vm6 = vcmp.eq.s32.totalorder %v1982_v53, 0 }
  0x14   :  { %1628 = vmatpush3.bf16.msra.mxu0 %v1627_v43  ;;  %vm2008_vm4 = vmand %vm1896_vm3, %vm272_vm9  ;;  %1647 = vmatprep.subr.msk.bf16.mxu1 %vm1646_vm15, %v1791_v33  ;;  %v2451_v61 = vsel %vm2014_vm0, 4294967295, %v2450_v61  ;;  %vm2034_vm11 = vcmp.eq.s32.totalorder %v170_v57, %v1860_v9  ;;  %v2454_v1 = vmov 0  ;;  %vm206_vm13 = vcmp.eq.s32.totalorder %v1998_v58, 0 }
  0x15   :  { %1629 = vmatprep.subr.bf16.mxu0 %v1788_v4  ;;  %vm2028_vm9 = vmand %vm1919_vm8, %vm273_vm12  ;;  %1649 = vmatpush3.bf16.msk.msra.mxu1 %vm1646_vm15, %v1791_v33  ;;  %v2455_v1 = vsel %vm2034_vm11, 4294967295, %v2454_v1  ;;  %v1636_v3 = vpack.c.bf16 %v49_v63, %v48_v62  ;;  %v159_v6 = vadd.s32 64, %v1858_v8  ;;  %v160_v10 = vadd.s32 72, %v1858_v8 }
  0x16   :  { %vm2043_vm3 = vmand %vm1933_vm10, %vm274_vm14  ;;  %vm275_vm14 = vcmp.eq.s32.totalorder %v1938_v39, 2  ;;  %vm276_vm10 = vcmp.eq.s32.totalorder %v1946_v42, 2  ;;  %v161_v21 = vadd.s32 80, %v1858_v8  ;;  %v162_v22 = vadd.s32 88, %v1858_v8 }
  0x17   :  { %vm217_vm12 = vmand %vm2014_vm0, %vm205_vm6  ;;  %v171_v11 = vand.u32 3, %v159_v6  ;;  %v172_v12 = vand.u32 3, %v160_v10  ;;  %v195_v14 = vshra.s32 %v159_v6, 5  ;;  %v196_v16 = vshra.s32 %v160_v10, 5 }
  0x18   :  { %1631 = vmatpush3.bf16.msra.mxu0 %v1630_v50  ;;  %vm218_vm15 = vmand %vm2034_vm11, %vm206_vm13  ;;  %vm278_vm13 = vcmp.eq.s32.totalorder %v1998_v58, 2  ;;  %v173_v23 = vand.u32 3, %v161_v21  ;;  %v174_v24 = vand.u32 3, %v162_v22  ;;  %v197_v26 = vshra.s32 %v161_v21, 5 }
  0x19   :  { %1632 = vmatprep.subr.bf16.mxu0 %v1788_v4  ;;  %vm1650_vm8 = vmpackc.low %vm218_vm15, %vm217_vm12  ;;  %vm2093_vm15 = vcmp.eq.s32.totalorder %v172_v12, %v1860_v9  ;;  %v198_v27 = vshra.s32 %v162_v22, 5  ;;  %v2478_v35 = vmov 0  ;;  %v145_v36 = vand.u32 31, %v1860_v9 }
  0x1a   :  { %vm1686_vm1 = vmpackc.low %vm2008_vm4, %vm1978_vm7  ;;  %1651 = vmatprep.subr.msk.bf16.mxu1 %vm1650_vm8, %v1791_v33  ;;  %v147_v43 = vshra.s32 %v1858_v8, 1  ;;  %v148_v46 = vshra.s32 %v1870_v13, 1  ;;  %v629_v60 = vand.u32 1, %v1858_v8  ;;  %v630_v62 = vand.u32 1, %v1870_v13 }
  0x1b   :  { %1653 = vmatpush3.bf16.msk.msra.mxu1 %vm1650_vm8, %v1791_v33  ;;  %vm1690_vm6 = vmpackc.low %vm2043_vm3, %vm2028_vm9  ;;  %vm277_vm8 = vcmp.eq.s32.totalorder %v1982_v53, 2  ;;  %v146_v41 = vshra.s32 %v145_v36, 2  ;;  %v907_v36 = vld [vmem:[%s2407_s5] sm:$0xff] }
  0x1c   :  { %1634 = vmatpush3.bf16.msra.mxu0 %v1633_v59  ;;  %vm287_vm7 = vmand %vm1964_vm2, %vm275_vm14  ;;  %vm207_vm14 = vcmp.eq.s32.totalorder %v195_v14, 0 }
  0x1d   :  { %1635 = vmatprep.subr.bf16.mxu0 %v1788_v4  ;;  %vm288_vm4 = vmand %vm1971_vm5, %vm276_vm10 }
  0x1e   :  { %vm1694_vm12 = vmpackc.low %vm288_vm4, %vm287_vm7  ;;  %vm279_vm4 = vcmp.eq.s32.totalorder %v195_v14, 2 }
  0x1f   :  { %vm289_vm3 = vmand %vm2014_vm0, %vm277_vm8 }
  0x20   :  { %1637 = vmatpush3.bf16.msra.mxu0 %v1636_v3  ;;  %vm290_vm9 = vmand %vm2034_vm11, %vm278_vm13  ;;  %vm280_vm13 = vcmp.eq.s32.totalorder %v196_v16, 2  ;;  %vm282_vm11 = vcmp.eq.s32.totalorder %v198_v27, 2 }
  0x21   :  { %1687 = vmatprep.subr.msk.bf16.mxu0 %vm1686_vm1, %v1791_v33  ;;  %vm1698_vm10 = vmpackc.low %vm290_vm9, %vm289_vm3 }
  0x22   :  { %vm292_vm9 = vmand %vm2093_vm15, %vm280_vm13 }
  0x23   :  { %1469 = vmatmul.mubr.f32.vlgmr.msra.gmra.mrb[0].mxu0 %v33_v5 }
  0x24   :  { %1689 = vmatpush3.bf16.msk.msra.mxu0 %vm1686_vm1, %v1791_v33  ;;  %vm2088_vm1 = vcmp.eq.s32.totalorder %v171_v11, %v1860_v9 }
  0x25   :  { %1691 = vmatprep.subr.msk.bf16.mxu0 %vm1690_vm6, %v1791_v33  ;;  %vm219_vm7 = vmand %vm2088_vm1, %vm207_vm14  ;;  %vm2115_vm14 = vcmp.eq.s32.totalorder %v174_v24, %v1860_v9 }
  0x26   :  { %vm291_vm3 = vmand %vm2088_vm1, %vm279_vm4 }
  0x28   :  { %1693 = vmatpush3.bf16.msk.msra.mxu0 %vm1690_vm6, %v1791_v33  ;;  %vm208_vm6 = vcmp.eq.s32.totalorder %v196_v16, 0 }
  0x29   :  { %1695 = vmatprep.subr.msk.bf16.mxu0 %vm1694_vm12, %v1791_v33  ;;  %vm220_vm8 = vmand %vm2093_vm15, %vm208_vm6  ;;  %vm209_vm6 = vcmp.eq.s32.totalorder %v197_v26, 0 }
  0x2c   :  { %1697 = vmatpush3.bf16.msk.msra.mxu0 %vm1694_vm12, %v1791_v33  ;;  %vm1654_vm12 = vmpackc.low %vm220_vm8, %vm219_vm7  ;;  %vm210_vm7 = vcmp.eq.s32.totalorder %v198_v27, 0 }
  0x2d   :  { %1699 = vmatprep.subr.msk.bf16.mxu0 %vm1698_vm10, %v1791_v33  ;;  %1655 = vmatprep.subr.msk.bf16.mxu1 %vm1654_vm12, %v1791_v33  ;;  %vm1702_vm8 = vmpackc.low %vm292_vm9, %vm291_vm3  ;;  %vm235_vm3 = vcmp.eq.s32.totalorder %v1874_v15, 1 }
  0x2e   :  { %1657 = vmatpush3.bf16.msk.msra.mxu1 %vm1654_vm12, %v1791_v33  ;;  %vm281_vm12 = vcmp.eq.s32.totalorder %v197_v26, 2  ;;  %vm222_vm13 = vmand %vm2115_vm14, %vm210_vm7  ;;  %vm2466_vm7 = vnez %v2429_v19  ;;  %v2472_v19 = vmov 0 }
  0x2f   :  { %vm294_vm9 = vmand %vm2115_vm14, %vm282_vm11  ;;  %vm244_vm11 = vcmp.eq.s32.totalorder %v196_v16, 1 }
  0x30   :  { %1701 = vmatpush3.bf16.msk.msra.mxu0 %vm1698_vm10, %v1791_v33  ;;  %vm2110_vm10 = vcmp.eq.s32.totalorder %v173_v23, %v1860_v9 }
  0x31   :  { %1703 = vmatprep.subr.msk.bf16.mxu0 %vm1702_vm8, %v1791_v33  ;;  %vm221_vm4 = vmand %vm2110_vm10, %vm209_vm6  ;;  %vm236_vm6 = vcmp.eq.s32.totalorder %v1885_v20, 1 }
  0x32   :  { %vm1658_vm0 = vmpackc.low %vm222_vm13, %vm221_vm4 }
  0x33   :  { %1659 = vmatprep.subr.msk.bf16.mxu1 %vm1658_vm0, %v1791_v33  ;;  %vm293_vm5 = vmand %vm2110_vm10, %vm281_vm12  ;;  %vm2469_vm12 = vnez %v2431_v25  ;;  %v2476_v25 = vmov 0 }
  0x34   :  { %1705 = vmatpush3.bf16.msk.msra.mxu0 %vm1702_vm8, %v1791_v33  ;;  %1661 = vmatpush3.bf16.msk.msra.mxu1 %vm1658_vm0, %v1791_v33  ;;  %vm1706_vm8 = vmpackc.low %vm294_vm9, %vm293_vm5  ;;  %vm243_vm5 = vcmp.eq.s32.totalorder %v195_v14, 1 }
  0x35   :  { %1707 = vmatprep.subr.msk.bf16.mxu0 %vm1706_vm8, %v1791_v33  ;;  %vm2136_vm4 = vmand %vm2466_vm7, %vm235_vm3  ;;  %vm246_vm7 = vcmp.eq.s32.totalorder %v198_v27, 1 }
  0x36   :  { %vm2143_vm13 = vmand %vm2469_vm12, %vm236_vm6  ;;  %vm149_vm6 = vcmp.eq.s32.totalorder %v146_v41, %v147_v43 }
  0x37   :  { %vm2421_vm0 = vmpackc.low %vm2143_vm13, %vm2136_vm4 }
  0x38   :  { %1709 = vmatpush3.bf16.msk.msra.mxu0 %vm1706_vm8, %v1791_v33  ;;  %1663 = vmatprep.subr.msk.bf16.mxu1 %vm2421_vm0, %v1791_v33  ;;  %vm2159_vm3 = vmand %vm2088_vm1, %vm243_vm5  ;;  %vm245_vm8 = vcmp.eq.s32.totalorder %v197_v26, 1  ;;  %vm134_vm5 = vcmask 1041408   ;;  %vm2483_vm0 = vnez %v2437_v37  ;;  %v740_v26 = vand.u32 3, %v1860_v9 }
  0x39   :  { %v2473_v19 = vsel %vm2159_vm3, 4294967295, %v2472_v19  ;;  %vm2165_vm9 = vmand %vm2093_vm15, %vm244_vm11  ;;  %vm138_vm15 = vcmask 1045504   ;;  %vm150_vm11 = vcmp.eq.s32.totalorder %v146_v41, %v148_v46  ;;  %vm240_vm3 = vcmp.eq.s32.totalorder %v1946_v42, 1 }
  0x3a   :  { %vm2175_vm12 = vmand %vm2110_vm10, %vm245_vm8  ;;  %vm237_vm10 = vcmp.eq.s32.totalorder %v1907_v28, 1  ;;  %vm2480_vm8 = vnez %v2435_v34 }
  0x3b   :  { %v2477_v25 = vsel %vm2175_vm12, 4294967295, %v2476_v25  ;;  %vm2181_vm1 = vmand %vm2115_vm14, %vm246_vm7  ;;  %vm238_vm14 = vcmp.eq.s32.totalorder %v1911_v29, 1 }
  0x3c   :  { %v2479_v35 = vsel %vm2181_vm1, 4294967295, %v2478_v35  ;;  %vm2199_vm7 = vmand %vm2480_vm8, %vm237_vm10  ;;  %vm239_vm10 = vcmp.eq.s32.totalorder %v1938_v39, 1  ;;  %vm2486_vm8 = vcmask 1043456   ;;  %vm307_vm1 = vcmask 785408  }
  0x3d   :  { %vm2207_vm12 = vmand %vm2483_vm0, %vm238_vm14 }
  0x3e   :  { %vm1666_vm0 = vmpackc.low %vm2207_vm12, %vm2199_vm7  ;;  %vm2496_vm7 = vnez %v2479_v35 }
  0x3f   :  { %vm2222_vm14 = vmand %vm1964_vm2, %vm239_vm10  ;;  %vm2491_vm10 = vnez %v2451_v61  ;;  %v2295_v61 = vand.u32 1, %v1860_v9 }
  0x40   :  { %vm2490_vm2 = vmpackc.low %vm2143_vm13, %vm2136_vm4  ;;  %vm2492_vm4 = vnez %v2455_v1 }
  0xf6   :  { %v123_v40 = vpop.f32.mrb[0].mxu0 }
  0xf7   :  { %v124_v44 = vadd.f32 %v1280_v38, %v123_v40  ;;  %v1470_v45 = vpop.f32.mrb[1].mxu0  ;;  %v908_v38 = vld [vmem:[%s2407_s5 + $0x8] sm:$0xff]  ;;  %v909_v40 = vld [vmem:[%s2407_s5 + $0x10] sm:$0xff] }
  0xf8   :  { %v1725_v41 = vpack.c.bf16 %v908_v38, %v907_v36 }
  0xf9   :  { %v128_v47 = vrot.slane %v124_v44, 6  ;;  %v130_v50 = vrot.slane %v124_v44, 4  ;;  %v132_v29 = vrot.slane %v124_v44, 2 }
  0xfb   :  { %v135_v52 = vsel %vm134_vm5, %v124_v44, %v128_v47  ;;  %vm2489_vm5 = vnez %v2443_v49  ;;  %v910_v44 = vld [vmem:[%s2407_s5 + $0x18] sm:$0xff]  ;;  %v827_v47 = vshra.s32 %v1860_v9, 2 }
  0xfc   :  { %v137_v34 = vsel %vm2486_vm8, %v135_v52, %v130_v50  ;;  %v1728_v45 = vpack.c.bf16 %v910_v44, %v909_v40  ;;  %v994_v50 = vld [vmem:[%s2409_s7] sm:$0xff] }
  0xfd   :  { %v139_v54 = vsel %vm138_vm15, %v137_v34, %v132_v29  ;;  %vm252_vm15 = vmand %vm2489_vm5, %vm240_vm3  ;;  %v1730_v52 = vpack.c.bf16 %v995_v51, %v994_v50 }
  0xfe   :  { %v151_v37 = vsel %vm149_vm6, %v139_v54, 0.0  ;;  %v152_v55 = vsel %vm150_vm11, %v139_v54, 0.0  ;;  %vm241_vm6 = vcmp.eq.s32.totalorder %v1982_v53, 1  ;;  %vm242_vm11 = vcmp.eq.s32.totalorder %v1998_v58, 1  ;;  %vm1670_vm3 = vmpackc.low %vm252_vm15, %vm2222_vm14 }
  0xff   :  { %1495 = vmatprep.mubr.msk.f32.mxu1 %vm307_vm1, %v151_v37  ;;  %1549 = vmatprep.mubr.msk.f32.mxu0 %vm307_vm1, %v151_v37  ;;  %vm253_vm8 = vmand %vm2491_vm10, %vm241_vm6  ;;  %vm2493_vm14 = vnez %v2473_v19  ;;  %vm633_vm10 = vcmp.eq.s32.totalorder %v630_v62, %v2295_v61  ;;  %v1169_v62 = vand.u32 7, %v1858_v8 }
 0x100   :  { %1496 = vmatmul.mubr.msk.f32.vlgmr.msra.gmra.mrb[0].mxu1 %vm307_vm1, %v152_v55  ;;  %1550 = vmatmul.mubr.msk.f32.vlgmr.msra.gmra.mrb[2].mxu0 %vm307_vm1, %v152_v55  ;;  %vm254_vm13 = vmand %vm2492_vm4, %vm242_vm11  ;;  %vm539_vm11 = vcmask 31744   ;;  %vm2500_vm4 = vcmask 1043456  }
 0x101   :  { %1665 = vmatpush3.bf16.msk.msra.mxu1 %vm2490_vm2, %v1791_v33  ;;  %1522 = vmatprep.mubr.msk.f32.mxu1 %vm307_vm1, %v151_v37  ;;  %vm1674_vm5 = vmpackc.low %vm254_vm13, %vm253_vm8  ;;  %vm741_vm8 = vcmp.eq.s32.totalorder %v1858_v8, %v740_v26 }
 0x102   :  { %1667 = vmatprep.subr.msk.bf16.mxu1 %vm1666_vm0, %v1791_v33  ;;  %vm2494_vm15 = vmpackc.low %vm2165_vm9, %vm2493_vm14  ;;  %v742_v27 = vsel %vm741_vm8, 1.0, %v1790_v7  ;;  %vm828_vm14 = vcmp.eq.s32.totalorder %v827_v47, %v147_v43  ;;  %v996_v43 = vld [vmem:[%s2409_s7 + $0x10] sm:$0xff]  ;;  %vm1253_vm8 = vcmask 58368  }
 0x103   :  { %vm2495_vm12 = vmmov %vm2494_vm15 }
 0x104   :  { %vm1711_vm9 = vmpackc.low %vm539_vm11, %vm539_vm11 }
 0x105   :  { %1669 = vmatpush3.bf16.msk.msra.mxu1 %vm1666_vm0, %v1791_v33  ;;  %vm2497_vm0 = vnez %v2477_v25  ;;  %vm2501_vm13 = vmmov %vm2500_vm4 }
 0x106   :  { %1671 = vmatprep.subr.msk.bf16.mxu1 %vm1670_vm3, %v1791_v33  ;;  %vm2498_vm6 = vmpackc.low %vm2496_vm7, %vm2497_vm0  ;;  %vm832_vm7 = vcmp.eq.s32.totalorder %v2295_v61, %v1858_v8  ;;  %vm918_vm0 = vcmask 261120  }
 0x107   :  { %vm2499_vm2 = vmmov %vm2498_vm6  ;;  %v833_v54 = vsel %vm832_vm7, 1.0, %v1790_v7 }
 0x109   :  { %1673 = vmatpush3.bf16.msk.msra.mxu1 %vm1670_vm3, %v1791_v33  ;;  %vm636_vm3 = vcmask 130048  }
 0x10a   :  { %1675 = vmatprep.subr.msk.bf16.mxu1 %vm1674_vm5, %v1791_v33 }
 0x10d   :  { %1677 = vmatpush3.bf16.msk.msra.mxu1 %vm1674_vm5, %v1791_v33  ;;  %vm2502_vm5 = vmmov 0  }
 0x10e   :  { %1679 = vmatprep.subr.msk.bf16.mxu1 %vm2494_vm15, %v1791_v33  ;;  %vm829_vm15 = vcmp.eq.s32.totalorder %v827_v47, %v148_v46  ;;  %v997_v46 = vld [vmem:[%s2409_s7 + $0x18] sm:$0xff] }
 0x10f   :  { %v1734_v37 = vpack.c.bf16 %v997_v46, %v996_v43 }
 0x111   :  { %1681 = vmatpush3.bf16.msk.msra.mxu1 %vm2495_vm12, %v1791_v33  ;;  %vm1722_vm12 = vmpackc.low %vm829_vm15, %vm828_vm14 }
 0x112   :  { %1683 = vmatprep.subr.msk.bf16.mxu1 %vm2498_vm6, %v1791_v33  ;;  %vm1740_vm6 = vmpackc.low %vm918_vm0, %vm918_vm0 }
 0x115   :  { %1685 = vmatpush3.bf16.msk.msra.mxu1 %vm2499_vm2, %v1791_v33  ;;  %vm1171_vm2 = vcmp.eq.s32.totalorder %v1169_v62, %v1860_v9 }
 0x118   :  { %1523 = vmatmul.mubr.msk.f32.vlgmr.msra.gmra.mrb[2].mxu1 %vm307_vm1, %v152_v55  ;;  %vm632_vm1 = vcmp.eq.s32.totalorder %v629_v60, %v2295_v61  ;;  %v992_v55 = vld [vmem:[%s2403_s1] sm:$0xff] }
 0x1d3   :  { %v1497_v39 = vpop.f32.mrb[0].mxu1  ;;  %v1551_v42 = vpop.f32.mrb[2].mxu0 }
 0x1d4   :  { %v380_v48 = vpop.f32.mrb[1].mxu1  ;;  %v530_v49 = vpop.f32.mrb[3].mxu0 }
 0x1d5   :  { %v1716_v53 = vpack.c.bf16 %v1551_v42, %v530_v49  ;;  %1556 = vmatprep.mubr.msk.f32.mxu1 %vm539_vm11, %v380_v48  ;;  %v1337_v48 = vld [vmem:[%s2410_s8] ss:$0 sm:$0xff] }
 0x1d7   :  { %1717 = vmatprep.subr.bf16.mxu0 %v1716_v53 }
 0x1d8   :  { %1719 = vmatpush3.bf16.msra.mxu0 %v1716_v53 }
 0x1d9   :  { %1720 = vmatprep.subr.bf16.mxu0 %v1788_v4 }
 0x1eb   :  { %v1524_v57 = vpop.f32.mrb[2].mxu1 }
 0x1ec   :  { %v455_v58 = vpop.f32.mrb[3].mxu1 }
 0x1ed   :  { %v1710_v59 = vpack.c.bf16 %v1524_v57, %v455_v58 }
 0x1ef   :  { %1712 = vmatprep.subr.msk.bf16.mxu1 %vm1711_vm9, %v1710_v59 }
 0x1f0   :  { %1715 = vmatpush3.bf16.xpose.msk.msra.mxu1 %vm1711_vm9, %v1710_v59  ;;  %v1335_v59 = vld [vmem:[%s2408_s6] ss:$0 sm:$0xff] }
 0x1f1   :  { %1566 = vmatprep.subr.msk.mxu1 %vm2500_vm4, %v742_v27 }
 0x1f7   :  { %1557 = vmatmul.mubr.msk.f32.vlgmr.msra.gmra.mrb[4].mxu1 %vm539_vm11, %v1497_v39 }
 0x1f8   :  { %1567 = vmatpush3.msk.msra.mxu1 %vm2501_vm13, %v742_v27 }
 0x1f9   :  { %1724 = vmatprep.subr.bf16.mxu1 %v1788_v4 }
 0x2ca   :  { %v1558_v63 = vpop.f32.mrb[4].mxu1 }
 0x2cb   :  { %v618_v0 = vpop.f32.mrb[5].mxu1  ;;  %v628_v1 = vmul.f32 0.5, %v1558_v63  ;;  %v1170_v63 = vand.u32 7, %v1870_v13 }
 0x2cc   :  { %v627_v2 = vmul.f32 0.5, %v618_v0  ;;  %v1166_v0 = vshra.s32 %v1860_v9, 3 }
 0x2cd   :  { %v635_v6 = vsel %vm633_vm10, %v628_v1, -inf }
 0x2ce   :  { %v634_v3 = vsel %vm632_vm1, %v627_v2, -inf  ;;  %v640_v10 = vsel %vm636_vm3, %v635_v6, -inf  ;;  %vm1167_vm1 = vcmp.eq.s32.totalorder %v1166_v0, %v1858_v8 }
 0x2cf   :  { %v637_v5 = vsel %vm636_vm3, %v634_v3, -inf }
 0x2d0   :  { %638 = vmax.xlane.f32.xlu0 %v637_v5 }
 0x2d4   :  { %641 = vmax.xlane.f32.xlu0 %v640_v10  ;;  %v1250_v10 = vld [vmem:[%s2404_s2] sm:$0x3]  ;;  %s1272_s2 = sshll.u32 %s1792_s20, 4  ;;  %s1273_s2 = int_to_ptr.vmem [resolvable:$true] %s1272_s2 }
 0x2d5   :  { %vm1251_vm10 = vcmp.eq.s32.totalorder %v1250_v10, 1  ;;  %s1764_s0 = scalar_lea.vmem %s1273_s2, 32  ;;  %p1769_p1 = scmp.lt.s32.totalorder %s1273_s2, %s1273_s2 }
 0x2d6   :  { %p1765_p0 = scmp.ne.s32.totalorder %s1273_s2, %s1764_s0  ;;  %p1770_p2 = scmp.lt.s32.totalorder %s1764_s0, %s1764_s0 }
 0x2d8   :  { %p1771_p3 = por %p1770_p2, %p1769_p1 }
 0x2da   :  { %p1772_p4 = pnand %p1771_p3, %p1765_p0 }
 0x35d   :  { %v639_v11 = vpop.xlane.xlu0 %638 }
 0x35e   :  { %v643_v12 = vsub.f32 %v634_v3, %v639_v11 }
 0x360   :  { %v645_v14 = vmul.f32 1.442695, %v643_v12 }
 0x361   :  { %v642_v16 = vpop.xlane.xlu0 %641 }
 0x362   :  { %1750 = vpow2.f32 %v645_v14  ;;  %v644_v17 = vsub.f32 %v635_v6, %v642_v16 }
 0x364   :  { %v647_v18 = vmul.f32 1.442695, %v644_v17 }
 0x366   :  { %1752 = vpow2.f32 %v647_v18 }
 0x36c   :  { %v1751_v21 = vpop.eup %1750 }
 0x36d   :  { %v649_v22 = vsel %vm636_vm3, %v1751_v21, 0.0 }
 0x36e   :  { %650 = vadd.xlane.f32.xlu1 %v649_v22 }
 0x370   :  { %v1753_v23 = vpop.eup %1752 }
 0x371   :  { %v652_v24 = vsel %vm636_vm3, %v1753_v23, 0.0 }
 0x372   :  { %653 = vadd.xlane.f32.xlu1 %v652_v24 }
 0x3fb   :  { %v651_v30 = vpop.xlane.xlu1 %650 }
 0x3fc   :  { %1754 = vrcp.f32 %v651_v30 }
 0x3ff   :  { %v654_v31 = vpop.xlane.xlu1 %653 }
 0x400   :  { %1756 = vrcp.f32 %v654_v31 }
 0x406   :  { %v1755_v32 = vpop.eup %1754 }
 0x407   :  { %v657_v15 = vmul.f32 %v1755_v32, %v1751_v21 }
 0x409   :  { %1563 = vmatprep.mubr.msk.f32.mxu0 %vm636_vm3, %v657_v15 }
 0x40a   :  { %v1757_v19 = vpop.eup %1756 }
 0x40b   :  { %v658_v20 = vmul.f32 %v1757_v19, %v1753_v23 }
 0x40d   :  { %1564 = vmatmul.mubr.msk.f32.vlgmr.msra.gmra.mrb[4].mxu0 %vm636_vm3, %v658_v20 }
 0x40e   :  { %1575 = vmatprep.mubr.msk.f32.mxu0 %vm2502_vm5, %v1790_v7 }
 0x4e0   :  { %v1565_v25 = vpop.f32.mrb[4].mxu0 }
 0x4e1   :  { %v731_v35 = vpop.f32.mrb[5].mxu0 }
 0x4e2   :  { %1568 = vmatprep.mubr.msk.f32.mxu1 %vm539_vm11, %v731_v35 }
 0x4e3   :  { %1569 = vmatmul.mubr.msk.f32.vlgmr.msra.gmra.mrb[6].mxu1 %vm539_vm11, %v1565_v25  ;;  %vm1172_vm11 = vcmp.eq.s32.totalorder %v1170_v63, %v1860_v9 }
 0x4e4   :  { %1586 = vmatprep.mubr.msk.f32.mxu1 %vm2502_vm5, %v1790_v7  ;;  %1726 = vmatpush3.bf16.msra.mxu1 %v1725_v41  ;;  %vm1743_vm9 = vmpackc.low %vm1172_vm11, %vm1171_vm2 }
 0x4e5   :  { %1727 = vmatprep.subr.bf16.mxu1 %v1788_v4 }
 0x4e8   :  { %1729 = vmatpush3.bf16.msra.mxu1 %v1728_v45 }
 0x4e9   :  { %1738 = vmatprep.subr.bf16.mxu1 %v1788_v4 }
 0x5b6   :  { %v1570_v28 = vpop.f32.mrb[6].mxu1 }
 0x5b7   :  { %v818_v29 = vpop.f32.mrb[7].mxu1 }
 0x5b8   :  { %v1721_v34 = vpack.c.bf16 %v1570_v28, %v818_v29 }
 0x5ba   :  { %1723 = vmatpush3.bf16.msk.msra.mxu0 %vm1722_vm12, %v1721_v34 }
 0x5bb   :  { %1731 = vmatprep.subr.bf16.mxu0 %v1730_v52 }
 0x5bd   :  { %1576 = vmatmul.mubr.msk.f32.vlgmr.msra.gmra.mrb[6].mxu0 %vm636_vm3, %v833_v54 }
 0x5be   :  { %1733 = vmatpush3.bf16.msra.mxu0 %v1730_v52  ;;  %1597 = vmatprep.mubr.msk.f32.mxu0 %vm918_vm0, %v992_v55 }
 0x5bf   :  { %1735 = vmatprep.subr.bf16.mxu0 %v1734_v37 }
 0x5c2   :  { %1737 = vmatpush3.bf16.msra.mxu0 %v1734_v37 }
 0x5c3   :  { %1742 = vmatprep.subr.bf16.mxu0 %v1788_v4 }
 0x5c5   :  { %1598 = vmatmul.mubr.msk.f32.vlgmr.msra.gmra.mrb[8].mxu0 %vm918_vm0, %v993_v56 }
 0x5c6   :  { %1611 = vmatprep.mubr.msk.f32.mxu0 %vm2502_vm5, %v1790_v7  ;;  %1744 = vmatpush3.bf16.msk.msra.mxu0 %vm1743_vm9, %v1791_v33 }
 0x690   :  { %v903_v39 = vpop.f32.mrb[6].mxu0 }
 0x691   :  { %v1577_v42 = vpop.f32.mrb[7].mxu0  ;;  %1587 = vmatmul.mubr.msk.f32.vlgmr.msra.gmra.mrb[8].mxu1 %vm918_vm0, %v903_v39 }
 0x692   :  { %1604 = vmatprep.mubr.msk.f32.mxu1 %vm2502_vm5, %v1790_v7 }
 0x698   :  { %v1599_v49 = vpop.f32.mrb[8].mxu0 }
 0x699   :  { %v1083_v53 = vadd.f32 %v1599_v49, %v1337_v48  ;;  %v1077_v57 = vpop.f32.mrb[9].mxu0 }
 0x69a   :  { %v1078_v4 = vadd.f32 %v1337_v48, %v1077_v57 }
 0x69c   :  { %v1739_v58 = vpack.c.bf16 %v1083_v53, %v1078_v4 }
 0x69e   :  { %1741 = vmatpush3.bf16.xpose.msk.msra.mxu1 %vm1740_vm6, %v1739_v58 }
 0x764   :  { %v988_v60 = vpop.f32.mrb[8].mxu1 }
 0x765   :  { %v989_v61 = vadd.f32 %v1335_v59, %v988_v60  ;;  %v1588_v7 = vpop.f32.mrb[9].mxu1 }
 0x767   :  { %1605 = vmatmul.mubr.msk.f32.vlgmr.msra.gmra.mrb[10].mxu1 %vm918_vm0, %v989_v61 }
 0x83a   :  { %v1161_v1 = vpop.f32.mrb[10].mxu1 }
 0x83b   :  { %v1165_v2 = vmul.f32 0.17677669, %v1161_v1  ;;  %v1606_v3 = vpop.f32.mrb[11].mxu1 }
 0x83d   :  { %v1168_v5 = vsel %vm1167_vm1, %v1165_v2, 0.0 }
 0x83e   :  { %1612 = vmatmul.mubr.msk.f32.vlgmr.msra.gmra.mrb[10].mxu0 %vm636_vm3, %v1168_v5 }
 0x911   :  { %v1244_v6 = vpop.f32.mrb[10].mxu0 }
 0x912   :  { %1758 = vtanh.f32 %v1244_v6  ;;  %v1613_v13 = vpop.f32.mrb[11].mxu0 }
 0x91c   :  { %v1759_v11 = vpop.eup %1758 }
 0x91d   :  { %v1249_v33 = vmul.f32 10.0, %v1759_v11 }
 0x91f   :  { %v1252_v9 = vsel %vm1251_vm10, -inf, %v1249_v33 }
 0x920   :  { %v1254_v12 = vsel %vm1253_vm8, %v1252_v9, -inf }
 0x921   :  { %1255 = vmax.xlane.f32.xlu0 %v1254_v12 }
 0x9ae   :  { %v1256_v8 = vpop.xlane.xlu0 %1255 }
 0x9af   :  { %v1257_v14 = vsub.f32 %v1252_v9, %v1256_v8 }
 0x9b1   :  { %v1258_v16 = vmul.f32 1.442695, %v1257_v14 }
 0x9b3   :  { %1760 = vpow2.f32 %v1258_v16 }
 0x9bd   :  { %v1761_v17 = vpop.eup %1760 }
 0x9be   :  { %v1260_v18 = vsel %vm1253_vm8, %v1761_v17, 0.0 }
 0x9bf   :  { %1261 = vadd.xlane.f32.xlu1 %v1260_v18 }
 0xa4c   :  { %v1262_v21 = vpop.xlane.xlu1 %1261 }
 0xa4d   :  { %1762 = vrcp.f32 %v1262_v21 }
 0xa57   :  { %v1763_v22 = vpop.eup %1762 }
 0xa58   :  { %v1264_v23 = vmul.f32 %v1763_v22, %v1761_v17 }
 0xa5a   :  { %1265 = vst.msk [vmem:[#allocation2] sm:$0x3] %vm1253_vm8, %v1264_v23 }
 0xa5b   :  { %1775 = shalt.err (!%p1772_p4)
}
 0xa5c   :  { %s1776_s22 = scalar_lea.hbm %s2411_s9, 32 }
 0xa5d   :  { %p1777_p5 = scmp.ne.s32.totalorder %s2411_s9, %s1776_s22  ;;  %p1780_p6 = scmp.lt.u32.totalorder %s1776_s22, %s2411_s9 }
 0xa5f   :  { %p1782_p7 = pnand %p1780_p6, %p1777_p5 }
 0xa61   :  { %1785 = shalt.err (!%p1782_p7)
}
 0xa62   :  { %1275 = dma.vmem_to_hbm [thread:$0]  %s1273_s2, 32, %s2411_s9, [#allocation3]  }
 0xa63   :  { %1786 = dma.done.wait [#allocation3], 32  }
 0xa64   :  { %1787 = vsyncadd [#allocation3], 4294967264 }
 0xa65   :  { %1279 = vsyncpa [#allocation3], 1 }

</bundles_post_ra>
